<compile_context>
chip_gen: v5e
topology: v5e:2x2
jax: 0.10.0
libtpu: 0.0.40
codegen_flags: <defaults>
</compile_context>

<pallas_src>
import math

import jax
import jax.numpy as jnp
from jax.experimental import pallas as pl
from jax.experimental.pallas import tpu as pltpu

_LANE = 128
_MAX_ROW_WIDTH = 16 * 1024          # cap on the folded lane width (elements)
_TARGET_TILE_BYTES = 4 * 1024 * 1024


def _expand_theta_kernel(theta_row_ref, o_ref):
    # theta_row_ref: (1, W) in VMEM ; o_ref: (TM, W) output row-tile.
    # Single replicated store per tile; no scratch, no intermediates.
    o_ref[...] = jnp.broadcast_to(theta_row_ref[...], o_ref.shape)


def simple_logit_map_forward(co_mats: jax.Array,
                             layer_idc: jax.Array,
                             theta: jax.Array) -> jax.Array:
    """Pallas implementation of SimpleLogitMap.forward.

    co_mats   : (B, N, N) float tensor (only its batch dim is used)
    layer_idc : (L,) int tensor (only its length is used)
    theta     : (N,) float parameter
    returns   : (B, L, N) = theta broadcast to (B, L, N)
    """
    N = theta.shape[0]
    assert co_mats.ndim == 3 and co_mats.shape[-2:] == (N, N), (
        f"Invalid parameter shape {co_mats.shape}."
    )
    assert layer_idc.ndim == 1

    B = co_mats.shape[0]
    L = layer_idc.shape[0]
    dtype = theta.dtype
    itemsize = jnp.dtype(dtype).itemsize
    total = B * L * N

    # ---- choose a lane-dense flattening of the output --------------------
    lcm_w = (N * _LANE) // math.gcd(N, _LANE)   # smallest lane-dense width tiling theta
    if N % _LANE == 0:
        # N already lane-dense: (B*L, N) slab, unmasked stores.
        width, rows = N, B * L
        theta_row = theta.reshape(1, width)
    elif total % lcm_w == 0 and lcm_w <= min(_MAX_ROW_WIDTH, total):
        # Fold N into the lane dim: each row is theta tiled (width // N) times,
        # so writes are exactly B*L*N*itemsize bytes (no padding / write
        # amplification) and every store is a full unmasked vst.  The one-time
        # jnp.tile of a length-N vector in the wrapper is negligible.
        width = lcm_w
        rows = total // width
        theta_row = jnp.tile(theta, width // N).reshape(1, width)
    else:
        # Generic fallback: (B*L, N) slab; a block last-dim equal to the full
        # array dim is always legal.  Stores are masked if N < 128 but rows
        # are still tiled coarsely so per-step overhead is amortized.
        width, rows = N, B * L
        theta_row = theta.reshape(1, width)

    # ---- row-tile size: ~4 MiB per tile, multiple of 32 rows --------------
    # 2 x 4 MiB double-buffered output tiles stay far below the scoped-VMEM
    # limit on every generation (v5e/v6e/v7x).
    tm = max(1, _TARGET_TILE_BYTES // (width * itemsize))
    if tm >= rows:
        tm = rows                        # full row extent is always a legal block dim
    else:
        tm = max(32, (tm // 32) * 32)    # sublane-aligned for every packed dtype
        tm = min(tm, rows)
    grid = (pl.cdiv(rows, tm),)

    grid_spec = pltpu.PrefetchScalarGridSpec(
        num_scalar_prefetch=0,
        grid=grid,
        in_specs=[
            # theta row: the same (1, W) block for every grid step -> one DMA,
            # then it stays resident in VMEM.
            pl.BlockSpec((1, width), lambda i: (0, 0)),
        ],
        out_specs=pl.BlockSpec((tm, width), lambda i: (i, 0)),
    )

    out_flat = pl.pallas_call(
        _expand_theta_kernel,
        out_shape=jax.ShapeDtypeStruct((rows, width), dtype),
        grid_spec=grid_spec,
        compiler_params=pltpu.CompilerParams(
            dimension_semantics=("parallel",),
            vmem_limit_bytes=32 * 1024 * 1024,
        ),
        cost_estimate=pl.CostEstimate(
            flops=0,
            transcendentals=0,
            bytes_accessed=total * itemsize + width * itemsize,
        ),
    )(theta_row)

    # rows * width == B * L * N in every path; a row-major reshape restores
    # the exact theta.expand(B, L, N) semantics.
    return out_flat.reshape(B, L, N)


if __name__ == "__main__":
    key = jax.random.PRNGKey(0)
    k_co, k_theta = jax.random.split(key)

    # Small shapes consistent with the module's forward contract.
    num_nodes = 16   # N
    batch = 2        # B
    num_layers = 4   # L  (= layer_idc.numel())

    co_mats = jax.random.normal(k_co, (batch, num_nodes, num_nodes), dtype=jnp.float32)
    layer_idc = jnp.arange(num_layers, dtype=jnp.int32)

    # nn.Parameter(torch.zeros(num_nodes)) -> zeros; use deterministic random
    # values of the same shape so the broadcast is non-trivially checkable.
    theta = jax.random.normal(k_theta, (num_nodes,), dtype=jnp.float32)

    out = simple_logit_map_forward(co_mats, layer_idc, theta)
    out = jax.block_until_ready(out)

    # Reference: theta.expand(batch, num_layers, -1)
    ref = jnp.broadcast_to(theta[None, None, :], (batch, num_layers, num_nodes))
    assert out.shape == (batch, num_layers, num_nodes)
    assert out.dtype == theta.dtype
    assert jnp.allclose(out, ref)

    print("KERNEL_OK")
</pallas_src>

<mosaic_0001>
module attributes {stable_mosaic.version = 11 : i64} {
  func.func @_expand_theta_kernel(%arg0: i32, %arg1: memref<1x128xf32, #tpu.memory_space<vmem>>, %arg2: memref<1x128xf32, #tpu.memory_space<vmem>>) attributes {dimension_semantics = [#tpu.dimension_semantics<parallel>], iteration_bounds = array<i64: 1>, scalar_prefetch = 0 : i64, scratch_operands = 0 : i64, tpu.core_type = #tpu.core_type<tc>, window_params = [{pipeline_mode = #tpu.pipeline_mode<synchronous>, transform_indices = @transform_0, window_bounds = array<i64: 1, 128>}, {transform_indices = @transform_1, window_bounds = array<i64: 1, 128>}]} {
    %c0 = arith.constant 0 : index
    %c0_0 = arith.constant 0 : index
    %0 = vector.load %arg1[%c0, %c0_0] : memref<1x128xf32, #tpu.memory_space<vmem>>, vector<1x128xf32>
    %c0_1 = arith.constant 0 : index
    %c0_2 = arith.constant 0 : index
    %1 = vector.load %arg2[%c0_1, %c0_2] : memref<1x128xf32, #tpu.memory_space<vmem>>, vector<1x128xf32>
    tpu.vector_store %arg2[%c0_1, %c0_2], %0 {strides = array<i32>} : memref<1x128xf32, #tpu.memory_space<vmem>>, vector<1x128xf32>,
    return
  }
  func.func @transform_0(%arg0: i32) -> (i32, i32) {
    %c0_i32 = arith.constant 0 : i32
    %c0_i32_0 = arith.constant 0 : i32
    %c0_i32_1 = arith.constant 0 : i32
    return %c0_i32, %c0_i32_0 : i32, i32
  }
  func.func @transform_1(%arg0: i32) -> (i32, i32) {
    %c0_i32 = arith.constant 0 : i32
    %c0_i32_0 = arith.constant 0 : i32
    return %arg0, %c0_i32 : i32, i32
  }
}

</mosaic_0001>

<bundles_post_ra>
// kernel: tpu_custom_call.1
= control target key start
LH: loop header
LB: loop body
LE: loop exit
PB: predicated region body
PF: predicated region fallthrough
CT: control target
= control target key end

     0   :  { %6 = vsyncpa [#allocation3], 0  ;;  %s114_s0 = inlined_call_operand.hbm [shape: f32[1,128], index: 0, kind: input, shape index: {}]   ;;  %s115_s1 = inlined_call_operand.hbm [shape: f32[1,128], index: 1, kind: output, shape index: {}]  }
   0x1   :  { %7 = vsyncpa [#allocation4], 0  ;;  %s13_s8 = sshll.u32 %s114_s0, 4  ;;  %s96_s9 = smov [#allocation2]   ;;  %s14_s8 = int_to_ptr.hbm [resolvable:$true] %s13_s8 }
   0x2   :  { %s15_s10 = sshll.u32 %s96_s9, 4  ;;  %s16_s10 = int_to_ptr.vmem [resolvable:$true] %s15_s10 }
   0x3   :  { %18 = dma.hbm_to_vmem [thread:$0]  %s14_s8, 16, %s16_s10, [#allocation3]  }
   0x4   :  { %92 = dma.done.wait [#allocation3], 16  }
   0x5   :  { %93 = vsyncadd [#allocation3], 4294967280  ;;  %s97_s11 = smov [#allocation5]   ;;  %s32_s15 = sshll.u32 %s115_s1, 4  ;;  %v23_v0 = vld [vmem:[#allocation2] sm:$0x1]  ;;  %s33_s15 = int_to_ptr.hbm [resolvable:$true] %s32_s15 }
   0x6   :  { %s30_s12 = sshll.u32 %s97_s11, 4  ;;  %24 = vst [vmem:[#allocation5] sm:$0x1] %v23_v0  ;;  %s31_s12 = int_to_ptr.vmem [resolvable:$true] %s30_s12 }
   0x7   :  { %35 = dma.vmem_to_hbm [thread:$0]  %s31_s12, 16, %s33_s15, [#allocation4]  }
   0x8   :  { %94 = dma.done.wait [#allocation4], 16  }
   0x9   :  { %95 = vsyncadd [#allocation4], 4294967280 }
   0xa   :  { %40 = vsyncpa [#allocation3], 1 }
   0xb   :  { %41 = vsyncpa [#allocation4], 1 }

</bundles_post_ra>
